<compile_context>
chip_gen: v5e
topology: v5e:2x2
jax: 0.10.0
libtpu: 0.0.40
codegen_flags: <defaults>
</compile_context>

<pallas_src>
import jax
import jax.numpy as jnp
from jax import lax
from jax.experimental import pallas as pl
from jax.experimental.pallas import tpu as pltpu

CTX_DIM = 512
N_CTX = 4                       # "X X X X" context slots in ctx_init
N_CLS_CTX = 4                   # learnable per-class context tokens
SEQ_LEN = 77                    # CLIP context length
PREFIX_LEN = N_CTX + 1          # embedding[:, : n_ctx + 1, :]          -> 5
SUFFIX_LEN = SEQ_LEN - PREFIX_LEN - N_CLS_CTX    # embedding[:, 9:, :]  -> 68
HEAD_LEN = PREFIX_LEN + N_CLS_CTX                # prefix + cls ctx     -> 9


def _prompt_kernel(label_ref, prefix_ref, suffix_ref, cls_ref, out_ref):
    # label_ref  : SMEM scalar-prefetch, int32 [b_pad]
    # prefix_ref : (1, PREFIX_LEN, CTX_DIM)          VMEM (constant block)
    # suffix_ref : (1, SUFFIX_LEN, CTX_DIM)          VMEM (constant block)
    # cls_ref    : (num_class, N_CLS_CTX, CTX_DIM)   VMEM (whole table resident)
    # out_ref    : (B_TILE, SEQ_LEN, CTX_DIM)        VMEM
    i = pl.program_id(0)
    b_tile = out_ref.shape[0]

    # Tiny (5,512) shared prefix: hoist the load out of the loop (4 vregs).
    prefix_v = prefix_ref[0].astype(out_ref.dtype)

    def body(j, carry):
        lbl = label_ref[i * b_tile + j]            # scalar read from SMEM
        # Shared prefix rows [0, 5).
        out_ref[j, :PREFIX_LEN, :] = prefix_v
        # Gathered per-class context rows [5, 9) -- the only per-element data.
        out_ref[j, PREFIX_LEN:HEAD_LEN, :] = cls_ref[lbl].astype(out_ref.dtype)
        # Shared suffix rows [9, 77).  Re-loaded from VMEM inside the loop on
        # purpose: 3 vld/cycle makes the reload essentially free and it avoids
        # keeping ~36 vregs live across the whole loop (spill risk), while the
        # large tile-wide broadcast store would materialize a huge temp.
        out_ref[j, HEAD_LEN:SEQ_LEN, :] = suffix_ref[0].astype(out_ref.dtype)
        return carry

    # Partial unroll keeps LLO scheduling visibility without code/vreg blowup
    # at large batch tiles.
    unroll = b_tile if b_tile <= 4 else 4
    lax.fori_loop(0, b_tile, body, 0, unroll=unroll)


def _pick_b_tile(b, max_tile):
    """Pick the per-grid-step batch tile.

    Preference order: (1) no padded tail (tile divides b exactly, so no extra
    output slice copy), (2) as large as possible to amortize per-step pipeline
    overhead, (3) leave >=2 grid steps for large b (v7x 2-TC sharding)."""
    if b <= max_tile:
        return b                      # single step: exact, no padding
    best = 1
    for d in range(max_tile, 0, -1):  # largest divisor of b that fits VMEM
        if b % d == 0:
            best = d
            break
    if 4 * best >= max_tile:          # decent divisor -> exact tiling
        return best
    return max_tile                   # degenerate (e.g. prime b): pad + slice


def prompt_learner_forward(label, token_prefix, token_suffix, cls_ctx,
                           *, b_tile=None):
    """label: int [b]; token_prefix: [1,5,512]; token_suffix: [1,68,512];
    cls_ctx: [num_class,4,512]  ->  prompts: [b,77,512]"""
    b = label.shape[0]
    num_class = cls_ctx.shape[0]
    dtype = cls_ctx.dtype
    itemsize = jnp.dtype(dtype).itemsize

    # Guard the in-kernel gather against out-of-range labels.
    label = jnp.clip(label.astype(jnp.int32), 0, num_class - 1)

    # Batch tile: ~5 MiB output block per buffer keeps the double-buffered
    # pipeline inside v5e's 16 MiB scoped-VMEM default while amortizing the
    # ~0.35 us per-step overhead (32 elems f32 / 64 elems bf16 per step).
    max_tile = 64 if itemsize <= 2 else 32
    if b_tile is None:
        b_tile = _pick_b_tile(b, max_tile)
    b_tile = max(1, min(b_tile, b))
    n_tiles = pl.cdiv(b, b_tile)
    b_pad = n_tiles * b_tile
    if b_pad != b:
        # Rare fallback (no decent divisor of b): padded rows are sliced off
        # below, so their (clamped, class-0) contents are never observed.
        label = jnp.pad(label, (0, b_pad - b))

    out_block_bytes = b_tile * SEQ_LEN * CTX_DIM * itemsize
    const_bytes = (PREFIX_LEN + SUFFIX_LEN) * CTX_DIM * itemsize
    cls_bytes = num_class * N_CLS_CTX * CTX_DIM * itemsize
    # Double-buffered output + (conservatively) double-buffered constant blocks
    # + resident class table, plus slack for semaphores/descriptors.
    vmem_need = 2 * out_block_bytes + 2 * const_bytes + 2 * cls_bytes + (1 << 20)
    vmem_limit = int(min(max(vmem_need, 16 << 20), 64 << 20))
    # TODO(synk): for very large num_class (>~1-2k) the resident cls table can
    # exceed VMEM; switch to a label-indexed BlockSpec / per-label DMA gather.

    bytes_accessed = (
        b_pad * SEQ_LEN * CTX_DIM * itemsize            # output writeback
        + const_bytes                                   # prefix+suffix read
        + cls_bytes                                     # cls table read once
        + b_pad * 4                                     # labels
    )

    grid_spec = pltpu.PrefetchScalarGridSpec(
        num_scalar_prefetch=1,
        grid=(n_tiles,),
        in_specs=[
            # Constant blocks: Pallas elides re-DMA across grid steps.
            pl.BlockSpec((1, PREFIX_LEN, CTX_DIM), lambda i, lbl: (0, 0, 0)),
            pl.BlockSpec((1, SUFFIX_LEN, CTX_DIM), lambda i, lbl: (0, 0, 0)),
            # Whole class-context table held in VMEM; gathered in-kernel.
            pl.BlockSpec((num_class, N_CLS_CTX, CTX_DIM),
                         lambda i, lbl: (0, 0, 0)),
        ],
        out_specs=pl.BlockSpec((b_tile, SEQ_LEN, CTX_DIM),
                               lambda i, lbl: (i, 0, 0)),
    )

    out = pl.pallas_call(
        _prompt_kernel,
        out_shape=jax.ShapeDtypeStruct((b_pad, SEQ_LEN, CTX_DIM), dtype),
        grid_spec=grid_spec,
        compiler_params=pltpu.CompilerParams(
            dimension_semantics=("parallel",),
            vmem_limit_bytes=vmem_limit),
        cost_estimate=pl.CostEstimate(
            flops=0, transcendentals=0, bytes_accessed=bytes_accessed),
    )(label, token_prefix, token_suffix, cls_ctx)

    return out[:b] if b_pad != b else out


def _reference(label, token_prefix, token_suffix, cls_ctx):
    b = label.shape[0]
    return jnp.concatenate(
        [
            jnp.broadcast_to(token_prefix, (b, PREFIX_LEN, CTX_DIM)),
            cls_ctx[label],
            jnp.broadcast_to(token_suffix, (b, SUFFIX_LEN, CTX_DIM)),
        ],
        axis=1,
    )


if __name__ == "__main__":
    num_class = 8
    dtype = jnp.float32

    key = jax.random.PRNGKey(0)
    k_emb, k_cls, k_lbl1, k_lbl2 = jax.random.split(key, 4)

    # Stand-in for token_embedding(clip.tokenize(ctx_init)): deterministic
    # synthetic embedding of shape (1, 77, 512).
    # TODO(synk): real CLIP tokenize + token_embedding lookup happen at module
    # __init__ time and are external; synthesized here.
    embedding = jax.random.normal(k_emb, (1, SEQ_LEN, CTX_DIM), dtype=dtype)
    token_prefix = embedding[:, : N_CTX + 1, :]                    # (1, 5, 512)
    token_suffix = embedding[:, N_CTX + 1 + N_CLS_CTX:, :]         # (1, 68, 512)

    # nn.init.normal_(cls_vectors, std=0.02)
    cls_ctx = 0.02 * jax.random.normal(
        k_cls, (num_class, N_CLS_CTX, CTX_DIM), dtype=dtype)

    # Case 1: tiny batch (single grid step, tile == batch, no padding).
    label = jnp.array([3, 0], dtype=jnp.int32)
    prompts = jax.block_until_ready(
        prompt_learner_forward(label, token_prefix, token_suffix, cls_ctx))
    ref = _reference(label, token_prefix, token_suffix, cls_ctx)
    assert prompts.shape == (2, SEQ_LEN, CTX_DIM)
    assert jnp.allclose(prompts, ref), "mismatch vs reference (batch=2)"

    # Case 2: awkward batch size (11) -> still a single exact tile, no pad/slice.
    label2 = jax.random.randint(k_lbl1, (11,), 0, num_class, dtype=jnp.int32)
    prompts2 = jax.block_until_ready(
        prompt_learner_forward(label2, token_prefix, token_suffix, cls_ctx))
    ref2 = _reference(label2, token_prefix, token_suffix, cls_ctx)
    assert prompts2.shape == (11, SEQ_LEN, CTX_DIM)
    assert jnp.allclose(prompts2, ref2), "mismatch vs reference (batch=11)"

    # Case 3: batch > max tile (48) -> exact divisor tile (24), 2 grid steps.
    label3 = jax.random.randint(k_lbl2, (48,), 0, num_class, dtype=jnp.int32)
    prompts3 = jax.block_until_ready(
        prompt_learner_forward(label3, token_prefix, token_suffix, cls_ctx))
    ref3 = _reference(label3, token_prefix, token_suffix, cls_ctx)
    assert prompts3.shape == (48, SEQ_LEN, CTX_DIM)
    assert jnp.allclose(prompts3, ref3), "mismatch vs reference (batch=48)"

    print("KERNEL_OK")
</pallas_src>

<mosaic_0001>
module attributes {stable_mosaic.version = 11 : i64} {
  func.func @_prompt_kernel(%arg0: i32, %arg1: memref<2xi32, #tpu.memory_space<smem>>, %arg2: memref<1x5x512xf32, #tpu.memory_space<vmem>>, %arg3: memref<1x68x512xf32, #tpu.memory_space<vmem>>, %arg4: memref<8x4x512xf32, #tpu.memory_space<vmem>>, %arg5: memref<2x77x512xf32, #tpu.memory_space<vmem>>) attributes {dimension_semantics = [#tpu.dimension_semantics<parallel>], iteration_bounds = array<i64: 1>, scalar_prefetch = 1 : i64, scratch_operands = 0 : i64, tpu.core_type = #tpu.core_type<tc>, window_params = [{pipeline_mode = #tpu.pipeline_mode<synchronous>, transform_indices = @transform_0, window_bounds = array<i64: 1, 5, 512>}, {pipeline_mode = #tpu.pipeline_mode<synchronous>, transform_indices = @transform_1, window_bounds = array<i64: 1, 68, 512>}, {pipeline_mode = #tpu.pipeline_mode<synchronous>, transform_indices = @transform_2, window_bounds = array<i64: 8, 4, 512>}, {transform_indices = @transform_3, window_bounds = array<i64: 2, 77, 512>}]} {
    %c0 = arith.constant 0 : index
    %c0_0 = arith.constant 0 : index
    %c0_1 = arith.constant 0 : index
    %0 = vector.load %arg2[%c0, %c0_0, %c0_1] : memref<1x5x512xf32, #tpu.memory_space<vmem>>, vector<1x5x512xf32>
    %1 = vector.shape_cast %0 : vector<1x5x512xf32> to vector<5x512xf32>
    %c0_i32 = arith.constant 0 : i32
    %c2_i32 = arith.constant 2 : i32
    %2 = arith.muli %arg0, %c2_i32 : i32
    %3 = arith.addi %2, %c0_i32 : i32
    %4 = arith.index_cast %3 : i32 to index
    %5 = memref.load %arg1[%4] : memref<2xi32, #tpu.memory_space<smem>>
    %6 = arith.index_cast %c0_i32 : i32 to index
    %c0_2 = arith.constant 0 : index
    %c0_3 = arith.constant 0 : index
    %7 = vector.load %arg5[%6, %c0_2, %c0_3] : memref<2x77x512xf32, #tpu.memory_space<vmem>>, vector<1x5x512xf32>
    %8 = vector.shape_cast %7 : vector<1x5x512xf32> to vector<5x512xf32>
    %9 = vector.shape_cast %1 : vector<5x512xf32> to vector<1x5x512xf32>
    tpu.vector_store %arg5[%6, %c0_2, %c0_3], %9 {strides = array<i32>} : memref<2x77x512xf32, #tpu.memory_space<vmem>>, vector<1x5x512xf32>,
    %10 = arith.index_cast %5 : i32 to index
    %c0_4 = arith.constant 0 : index
    %c0_5 = arith.constant 0 : index
    %11 = vector.load %arg4[%10, %c0_4, %c0_5] : memref<8x4x512xf32, #tpu.memory_space<vmem>>, vector<1x4x512xf32>
    %12 = vector.shape_cast %11 : vector<1x4x512xf32> to vector<4x512xf32>
    %13 = arith.index_cast %c0_i32 : i32 to index
    %c5 = arith.constant 5 : index
    %c0_6 = arith.constant 0 : index
    %14 = vector.load %arg5[%13, %c5, %c0_6] : memref<2x77x512xf32, #tpu.memory_space<vmem>>, vector<1x4x512xf32>
    %15 = vector.shape_cast %14 : vector<1x4x512xf32> to vector<4x512xf32>
    %16 = vector.shape_cast %12 : vector<4x512xf32> to vector<1x4x512xf32>
    tpu.vector_store %arg5[%13, %c5, %c0_6], %16 {strides = array<i32>} : memref<2x77x512xf32, #tpu.memory_space<vmem>>, vector<1x4x512xf32>,
    %c0_7 = arith.constant 0 : index
    %c0_8 = arith.constant 0 : index
    %c0_9 = arith.constant 0 : index
    %17 = vector.load %arg3[%c0_7, %c0_8, %c0_9] : memref<1x68x512xf32, #tpu.memory_space<vmem>>, vector<1x68x512xf32>
    %18 = vector.shape_cast %17 : vector<1x68x512xf32> to vector<68x512xf32>
    %19 = arith.index_cast %c0_i32 : i32 to index
    %c9 = arith.constant 9 : index
    %c0_10 = arith.constant 0 : index
    %20 = vector.load %arg5[%19, %c9, %c0_10] : memref<2x77x512xf32, #tpu.memory_space<vmem>>, vector<1x68x512xf32>
    %21 = vector.shape_cast %20 : vector<1x68x512xf32> to vector<68x512xf32>
    %22 = vector.shape_cast %18 : vector<68x512xf32> to vector<1x68x512xf32>
    tpu.vector_store %arg5[%19, %c9, %c0_10], %22 {strides = array<i32>} : memref<2x77x512xf32, #tpu.memory_space<vmem>>, vector<1x68x512xf32>,
    %c1_i32 = arith.constant 1 : i32
    %c2_i32_11 = arith.constant 2 : i32
    %23 = arith.muli %arg0, %c2_i32_11 : i32
    %24 = arith.addi %23, %c1_i32 : i32
    %25 = arith.index_cast %24 : i32 to index
    %26 = memref.load %arg1[%25] : memref<2xi32, #tpu.memory_space<smem>>
    %27 = arith.index_cast %c1_i32 : i32 to index
    %c0_12 = arith.constant 0 : index
    %c0_13 = arith.constant 0 : index
    %28 = vector.load %arg5[%27, %c0_12, %c0_13] : memref<2x77x512xf32, #tpu.memory_space<vmem>>, vector<1x5x512xf32>
    %29 = vector.shape_cast %28 : vector<1x5x512xf32> to vector<5x512xf32>
    %30 = vector.shape_cast %1 : vector<5x512xf32> to vector<1x5x512xf32>
    tpu.vector_store %arg5[%27, %c0_12, %c0_13], %30 {strides = array<i32>} : memref<2x77x512xf32, #tpu.memory_space<vmem>>, vector<1x5x512xf32>,
    %31 = arith.index_cast %26 : i32 to index
    %c0_14 = arith.constant 0 : index
    %c0_15 = arith.constant 0 : index
    %32 = vector.load %arg4[%31, %c0_14, %c0_15] : memref<8x4x512xf32, #tpu.memory_space<vmem>>, vector<1x4x512xf32>
    %33 = vector.shape_cast %32 : vector<1x4x512xf32> to vector<4x512xf32>
    %34 = arith.index_cast %c1_i32 : i32 to index
    %c5_16 = arith.constant 5 : index
    %c0_17 = arith.constant 0 : index
    %35 = vector.load %arg5[%34, %c5_16, %c0_17] : memref<2x77x512xf32, #tpu.memory_space<vmem>>, vector<1x4x512xf32>
    %36 = vector.shape_cast %35 : vector<1x4x512xf32> to vector<4x512xf32>
    %37 = vector.shape_cast %33 : vector<4x512xf32> to vector<1x4x512xf32>
    tpu.vector_store %arg5[%34, %c5_16, %c0_17], %37 {strides = array<i32>} : memref<2x77x512xf32, #tpu.memory_space<vmem>>, vector<1x4x512xf32>,
    %c0_18 = arith.constant 0 : index
    %c0_19 = arith.constant 0 : index
    %c0_20 = arith.constant 0 : index
    %38 = vector.load %arg3[%c0_18, %c0_19, %c0_20] : memref<1x68x512xf32, #tpu.memory_space<vmem>>, vector<1x68x512xf32>
    %39 = vector.shape_cast %38 : vector<1x68x512xf32> to vector<68x512xf32>
    %40 = arith.index_cast %c1_i32 : i32 to index
    %c9_21 = arith.constant 9 : index
    %c0_22 = arith.constant 0 : index
    %41 = vector.load %arg5[%40, %c9_21, %c0_22] : memref<2x77x512xf32, #tpu.memory_space<vmem>>, vector<1x68x512xf32>
    %42 = vector.shape_cast %41 : vector<1x68x512xf32> to vector<68x512xf32>
    %43 = vector.shape_cast %39 : vector<68x512xf32> to vector<1x68x512xf32>
    tpu.vector_store %arg5[%40, %c9_21, %c0_22], %43 {strides = array<i32>} : memref<2x77x512xf32, #tpu.memory_space<vmem>>, vector<1x68x512xf32>,
    %c2_i32_23 = arith.constant 2 : i32
    return
  }
  func.func @transform_0(%arg0: i32, %arg1: memref<2xi32, #tpu.memory_space<smem>>) -> (i32, i32, i32) {
    %c0_i32 = arith.constant 0 : i32
    %c0_i32_0 = arith.constant 0 : i32
    %c0_i32_1 = arith.constant 0 : i32
    %c0_i32_2 = arith.constant 0 : i32
    return %c0_i32, %c0_i32_0, %c0_i32_1 : i32, i32, i32
  }
  func.func @transform_1(%arg0: i32, %arg1: memref<2xi32, #tpu.memory_space<smem>>) -> (i32, i32, i32) {
    %c0_i32 = arith.constant 0 : i32
    %c0_i32_0 = arith.constant 0 : i32
    %c0_i32_1 = arith.constant 0 : i32
    %c0_i32_2 = arith.constant 0 : i32
    return %c0_i32, %c0_i32_0, %c0_i32_1 : i32, i32, i32
  }
  func.func @transform_2(%arg0: i32, %arg1: memref<2xi32, #tpu.memory_space<smem>>) -> (i32, i32, i32) {
    %c0_i32 = arith.constant 0 : i32
    %c0_i32_0 = arith.constant 0 : i32
    %c0_i32_1 = arith.constant 0 : i32
    %c0_i32_2 = arith.constant 0 : i32
    return %c0_i32, %c0_i32_0, %c0_i32_1 : i32, i32, i32
  }
  func.func @transform_3(%arg0: i32, %arg1: memref<2xi32, #tpu.memory_space<smem>>) -> (i32, i32, i32) {
    %c0_i32 = arith.constant 0 : i32
    %c0_i32_0 = arith.constant 0 : i32
    %c0_i32_1 = arith.constant 0 : i32
    return %arg0, %c0_i32, %c0_i32_0 : i32, i32, i32
  }
}

</mosaic_0001>

<bundles_post_ra>
// kernel: tpu_custom_call.1
= control target key start
LH: loop header
LB: loop body
LE: loop exit
PB: predicated region body
PF: predicated region fallthrough
CT: control target
= control target key end

     0   :  { %s603_s18 = smov [#allocation3]   ;;  %s1252_s0 = inlined_call_operand.vmem [shape: s32[2], index: 0, kind: input, shape index: {}]   ;;  %s1253_s1 = inlined_call_operand.vmem [shape: f32[1,5,512], index: 1, kind: input, shape index: {}]   ;;  %s1254_s2 = inlined_call_operand.vmem [shape: f32[1,68,512], index: 2, kind: input, shape index: {}]   ;;  %s1255_s3 = inlined_call_operand.vmem [shape: f32[8,4,512], index: 3, kind: input, shape index: {}]   ;;  %s1256_s4 = inlined_call_operand.vmem [shape: f32[2,77,512], index: 4, kind: output, shape index: {}]  }
   0x1   :  { %s10_s17 = sshll.u32 %s1252_s0, 4  ;;  %s11_s17 = int_to_ptr.vmem [resolvable:$true] %s10_s17 }
   0x2   :  { %13 = dma.vmem_to_smem %s11_s17, 16, %s603_s18, [#allocation2] }
   0x3   :  { %601 = dma.done.wait [#allocation2], 16 }
   0x4   :  { %602 = vsyncadd [#allocation2], 4294967280 }
   0x5   :  { %16 = sfence }
   0x6   :  { %s28_s19 = sld [smem:[#allocation3]]  ;;  %v23_v0 = vld [vmem:[%s1253_s1] sm:$0x1f]  ;;  %v24_v1 = vld [vmem:[%s1253_s1 + $0x8] sm:$0x1f]  ;;  %v65_v7 = vld [vmem:[%s1254_s2 + $0x10] sm:$0xff] }
   0x7   :  { %s638_s24 = sld [smem:[#allocation3 + $0x1]]  ;;  %29 = vst [vmem:[%s1256_s4] sm:$0x1f] %v23_v0  ;;  %v25_v2 = vld [vmem:[%s1253_s1 + $0x10] sm:$0x1f]  ;;  %v63_v3 = vld [vmem:[%s1254_s2] sm:$0xff]  ;;  %v64_v5 = vld [vmem:[%s1254_s2 + $0x8] sm:$0xff] }
   0x8   :  { %536 = vst [vmem:[%s1256_s4 + $0x140] sm:$0x1f] %v23_v0  ;;  %v26_v4 = vld [vmem:[%s1253_s1 + $0x18] sm:$0x1f]  ;;  %v667_v6 = vld [vmem:[%s1254_s2 + $0x20] sm:$0xff]  ;;  %v684_v8 = vrot.slane %v63_v3, 7 }
   0x9   :  { %30 = vst [vmem:[%s1256_s4 + $0x8] sm:$0x1f] %v24_v1  ;;  %v686_v9 = vrot.slane %v64_v5, 7  ;;  %v66_v10 = vld [vmem:[%s1254_s2 + $0x18] sm:$0xff]  ;;  %v140_v11 = vrot.slane %v667_v6, 7  ;;  %v68_v14 = vld [vmem:[%s1254_s2 + $0x28] sm:$0xff] }
   0xa   :  { %537 = vst [vmem:[%s1256_s4 + $0x148] sm:$0x1f] %v24_v1  ;;  %v699_v15 = vrot.slane %v65_v7, 7  ;;  %vm135_vm0 = vcmask 1040384   ;;  %v701_v16 = vrot.slane %v66_v10, 7  ;;  %v142_v17 = vrot.slane %v68_v14, 7 }
   0xb   :  { %31 = vst [vmem:[%s1256_s4 + $0x10] sm:$0x1f] %v25_v2  ;;  %v716_v18 = vsel %vm135_vm0, %v684_v8, %v140_v11  ;;  %v69_v28 = vld [vmem:[%s1254_s2 + $0x30] sm:$0xff]  ;;  %v70_v29 = vld [vmem:[%s1254_s2 + $0x38] sm:$0xff]  ;;  %v71_v31 = vld [vmem:[%s1254_s2 + $0x40] sm:$0xff] }
   0xc   :  { %s586_s18 = sshll.u32 %s28_s19, 4  ;;  %538 = vst [vmem:[%s1256_s4 + $0x150] sm:$0x1f] %v25_v2  ;;  %v732_v21 = vsel %vm135_vm0, %v686_v9, %v142_v17  ;;  %v144_v32 = vrot.slane %v69_v28, 7  ;;  %v72_v33 = vld [vmem:[%s1254_s2 + $0x48] sm:$0xff]  ;;  %v146_v35 = vrot.slane %v70_v29, 7 }
   0xd   :  { %s35_s26 = scalar_lea.vmem %s1255_s3, %s586_s18  ;;  %32 = vst [vmem:[%s1256_s4 + $0x18] sm:$0x1f] %v26_v4  ;;  %s587_s29 = sshll.u32 %s638_s24, 4  ;;  %v73_v36 = vld [vmem:[%s1254_s2 + $0x50] sm:$0xff]  ;;  %v148_v37 = vrot.slane %v71_v31, 7  ;;  %v74_v38 = vld [vmem:[%s1254_s2 + $0x58] sm:$0xff] }
   0xe   :  { %v36_v12 = vld [vmem:[%s35_s26] sm:$0xff]  ;;  %v37_v13 = vld [vmem:[%s35_s26 + $0x8] sm:$0xff]  ;;  %539 = vst [vmem:[%s1256_s4 + $0x158] sm:$0x1f] %v26_v4  ;;  %s285_s10 = scalar_lea.vmem %s1255_s3, %s587_s29  ;;  %v150_v39 = vrot.slane %v72_v33, 7  ;;  %v779_v41 = vsel %vm135_vm0, %v699_v15, %v144_v32  ;;  %v152_v42 = vrot.slane %v73_v36, 7  ;;  %v789_v44 = vsel %vm135_vm0, %v701_v16, %v146_v35 }
   0xf   :  { %40 = vst [vmem:[#allocation1] ss:$2 sm:$0xff] %v36_v12  ;;  %v286_v19 = vld [vmem:[%s285_s10] sm:$0xff]  ;;  %v287_v20 = vld [vmem:[%s285_s10 + $0x8] sm:$0xff]  ;;  %v154_v45 = vrot.slane %v74_v38, 7  ;;  %v77_v46 = vld [vmem:[%s1254_s2 + $0x70] sm:$0xff]  ;;  %v798_v47 = vsel %vm135_vm0, %v140_v11, %v148_v37 }
  0x10   :  { %42 = vst [vmem:[#allocation1 + $0x10] ss:$2 sm:$0xff] %v37_v13  ;;  %v75_v40 = vld [vmem:[%s1254_s2 + $0x60] sm:$0xff]  ;;  %v76_v43 = vld [vmem:[%s1254_s2 + $0x68] sm:$0xff]  ;;  %v78_v49 = vld [vmem:[%s1254_s2 + $0x78] sm:$0xff]  ;;  %v808_v50 = vsel %vm135_vm0, %v142_v17, %v150_v39  ;;  %v818_v53 = vsel %vm135_vm0, %v144_v32, %v152_v42  ;;  %v160_v54 = vrot.slane %v77_v46, 7 }
  0x11   :  { %240 = vst [vmem:[%s1256_s4 + $0x20] sm:$0xfe] %v684_v8  ;;  %v156_v48 = vrot.slane %v75_v40, 7  ;;  %v158_v51 = vrot.slane %v76_v43, 7  ;;  %v79_v52 = vld [vmem:[%s1254_s2 + $0x80] sm:$0xff]  ;;  %v80_v55 = vld [vmem:[%s1254_s2 + $0x88] sm:$0xff]  ;;  %v828_v56 = vsel %vm135_vm0, %v146_v35, %v154_v45 }
  0x12   :  { %241 = vst [vmem:[%s1256_s4 + $0x28] sm:$0xfe] %v686_v9  ;;  %v162_v57 = vrot.slane %v78_v49, 7  ;;  %v81_v58 = vld [vmem:[%s1254_s2 + $0x90] sm:$0xff]  ;;  %v164_v60 = vrot.slane %v79_v52, 7  ;;  %v82_v61 = vld [vmem:[%s1254_s2 + $0x98] sm:$0xff]  ;;  %v858_v1 = vsel %vm135_vm0, %v152_v42, %v160_v54 }
  0x13   :  { %242 = vst [vmem:[%s1256_s4 + $0x30] sm:$0xfe] %v699_v15  ;;  %v838_v59 = vsel %vm135_vm0, %v148_v37, %v156_v48  ;;  %v848_v62 = vsel %vm135_vm0, %v150_v39, %v158_v51  ;;  %v166_v63 = vrot.slane %v80_v55, 7  ;;  %v83_v0 = vld [vmem:[%s1254_s2 + $0xa0] sm:$0xff]  ;;  %v168_v2 = vrot.slane %v81_v58, 7  ;;  %v84_v3 = vld [vmem:[%s1254_s2 + $0xa8] sm:$0xff] }
  0x14   :  { %243 = vst [vmem:[%s1256_s4 + $0x38] sm:$0xfe] %v701_v16  ;;  %v868_v4 = vsel %vm135_vm0, %v154_v45, %v162_v57  ;;  %v170_v5 = vrot.slane %v82_v61, 7  ;;  %v85_v6 = vld [vmem:[%s1254_s2 + $0xb0] sm:$0xff]  ;;  %v878_v7 = vsel %vm135_vm0, %v156_v48, %v164_v60  ;;  %v172_v10 = vrot.slane %v83_v0, 7  ;;  %v86_v11 = vld [vmem:[%s1254_s2 + $0xb8] sm:$0xff] }
  0x15   :  { %244 = vst [vmem:[%s1256_s4 + $0x40] sm:$0xff] %v716_v18  ;;  %v888_v12 = vsel %vm135_vm0, %v158_v51, %v166_v63  ;;  %v174_v13 = vrot.slane %v84_v3, 7  ;;  %v87_v14 = vld [vmem:[%s1254_s2 + $0xc0] sm:$0xff]  ;;  %v898_v17 = vsel %vm135_vm0, %v160_v54, %v168_v2  ;;  %v92_v33 = vld [vmem:[%s1254_s2 + $0xe8] sm:$0xff]  ;;  %v93_v36 = vld [vmem:[%s1254_s2 + $0xf0] sm:$0xff] }
  0x16   :  { %v43_v22 = vld.sshfl [vmem:[#allocation1] sm:$0xff pattern:$0x75316420]  ;;  %v44_v23 = vld.sshfl [vmem:[#allocation1 + $0x8] sm:$0xff pattern:$0x75316420] }
  0x17   :  { %290 = vst [vmem:[#allocation1] ss:$2 sm:$0xff] %v286_v19  ;;  %v45_v24 = vld.sshfl [vmem:[#allocation1 + $0x10] sm:$0xff pattern:$0x75316420]  ;;  %v47_v25 = vrot.slane %v43_v22, 3  ;;  %v908_v22 = vsel %vm135_vm0, %v162_v57, %v170_v5  ;;  %v928_v28 = vsel %vm135_vm0, %v166_v63, %v174_v13 }
  0x18   :  { %v46_v26 = vld.sshfl [vmem:[#allocation1 + $0x18] sm:$0xff pattern:$0x75316420]  ;;  %v48_v27 = vrot.slane %v44_v23, 3  ;;  %245 = vst [vmem:[%s1256_s4 + $0x48] sm:$0xff] %v732_v21  ;;  %v49_v30 = vrot.slane %v45_v24, 3 }
  0x19   :  { %292 = vst [vmem:[#allocation1 + $0x10] ss:$2 sm:$0xff] %v287_v20  ;;  %v50_v34 = vrot.slane %v46_v26, 3  ;;  %v176_v19 = vrot.slane %v85_v6, 7  ;;  %v88_v20 = vld [vmem:[%s1254_s2 + $0xc8] sm:$0xff]  ;;  %v178_v23 = vrot.slane %v86_v11, 7 }
  0x1a   :  { %55 = vst [vmem:[%s1256_s4] sm:$0xe0] %v47_v25  ;;  %v89_v24 = vld [vmem:[%s1254_s2 + $0xd0] sm:$0xff]  ;;  %v180_v26 = vrot.slane %v87_v14, 7  ;;  %v182_v29 = vrot.slane %v88_v20, 7  ;;  %v94_v39 = vld [vmem:[%s1254_s2 + $0xf8] sm:$0xff]  ;;  %v972_v42 = vrot.slane %v92_v33, 7 }
  0x1b   :  { %59 = vst [vmem:[%s1256_s4 + $0x20] sm:$0x1] %v47_v25  ;;  %v918_v25 = vsel %vm135_vm0, %v164_v60, %v172_v10  ;;  %v938_v31 = vsel %vm135_vm0, %v168_v2, %v176_v19  ;;  %v184_v32 = vrot.slane %v89_v24, 7  ;;  %v95_v43 = vld [vmem:[%s1254_s2 + $0x100] sm:$0xf]  ;;  %v984_v46 = vrot.slane %v93_v36, 7 }
  0x1c   :  { %56 = vst [vmem:[%s1256_s4 + $0x8] sm:$0xe0] %v48_v27  ;;  %v958_v37 = vsel %vm135_vm0, %v172_v10, %v180_v26  ;;  %v970_v40 = vsel %vm135_vm0, %v174_v13, %v182_v29  ;;  %v96_v48 = vld [vmem:[%s1254_s2 + $0x108] sm:$0xf]  ;;  %v996_v51 = vrot.slane %v94_v39, 7  ;;  %v196_v55 = vrot.slane %v95_v43, 7 }
  0x1d   :  { %60 = vst [vmem:[%s1256_s4 + $0x28] sm:$0x1] %v48_v27  ;;  %v90_v27 = vld [vmem:[%s1254_s2 + $0xd8] sm:$0xff]  ;;  %v982_v45 = vsel %vm135_vm0, %v176_v19, %v184_v32  ;;  %v97_v52 = vld [vmem:[%s1254_s2 + $0x110] sm:$0xf]  ;;  %v1018_v58 = vsel %vm135_vm0, %v182_v29, %v972_v42  ;;  %v198_v60 = vrot.slane %v96_v48, 7  ;;  %v1026_v61 = vsel %vm135_vm0, %v184_v32, %v984_v46 }
  0x1e   :  { %57 = vst [vmem:[%s1256_s4 + $0x10] sm:$0xe0] %v49_v30  ;;  %v186_v35 = vrot.slane %v90_v27, 7  ;;  %v98_v57 = vld [vmem:[%s1254_s2 + $0x118] sm:$0xf]  ;;  %v200_v63 = vrot.slane %v97_v52, 7 }
  0x1f   :  { %61 = vst [vmem:[%s1256_s4 + $0x30] sm:$0x1] %v49_v30  ;;  %v91_v30 = vld [vmem:[%s1254_s2 + $0xe0] sm:$0xff]  ;;  %v202_v2 = vrot.slane %v98_v57, 7  ;;  %v199_v6 = vsel %vm135_vm0, %v972_v42, %v198_v60 }
  0x20   :  { %58 = vst [vmem:[%s1256_s4 + $0x18] sm:$0xe0] %v50_v34  ;;  %v960_v38 = vrot.slane %v91_v30, 7  ;;  %v994_v49 = vsel %vm135_vm0, %v178_v23, %v186_v35  ;;  %v1034_v0 = vsel %vm135_vm0, %v186_v35, %v996_v51  ;;  %v201_v10 = vsel %vm135_vm0, %v984_v46, %v200_v63  ;;  %v294_v11 = vld.sshfl [vmem:[#allocation1 + $0x8] sm:$0xff pattern:$0x75316420] }
  0x21   :  { %62 = vst [vmem:[%s1256_s4 + $0x38] sm:$0x1] %v50_v34  ;;  %v948_v34 = vsel %vm135_vm0, %v170_v5, %v178_v23  ;;  %v293_v5 = vld.sshfl [vmem:[#allocation1] sm:$0xff pattern:$0x75316420]  ;;  %v203_v13 = vsel %vm135_vm0, %v996_v51, %v202_v2  ;;  %v298_v20 = vrot.slane %v294_v11, 3 }
  0x22   :  { %246 = vst [vmem:[%s1256_s4 + $0x50] sm:$0xff] %v779_v41  ;;  %v1007_v54 = vsel %vm135_vm0, %v180_v26, %v960_v38  ;;  %v197_v3 = vsel %vm135_vm0, %v960_v38, %v196_v55  ;;  %v297_v14 = vrot.slane %v293_v5, 3  ;;  %v295_v19 = vld.sshfl [vmem:[#allocation1 + $0x10] sm:$0xff pattern:$0x75316420] }
  0x23   :  { %247 = vst [vmem:[%s1256_s4 + $0x58] sm:$0xff] %v789_v44  ;;  %v296_v23 = vld.sshfl [vmem:[#allocation1 + $0x18] sm:$0xff pattern:$0x75316420]  ;;  %v299_v24 = vrot.slane %v295_v19, 3 }
  0x24   :  { %248 = vst [vmem:[%s1256_s4 + $0x60] sm:$0xff] %v798_v47  ;;  %v300_v26 = vrot.slane %v296_v23, 3 }
  0x25   :  { %249 = vst [vmem:[%s1256_s4 + $0x68] sm:$0xff] %v808_v50 }
  0x26   :  { %250 = vst [vmem:[%s1256_s4 + $0x70] sm:$0xff] %v818_v53 }
  0x27   :  { %251 = vst [vmem:[%s1256_s4 + $0x78] sm:$0xff] %v828_v56 }
  0x28   :  { %252 = vst [vmem:[%s1256_s4 + $0x80] sm:$0xff] %v838_v59 }
  0x29   :  { %253 = vst [vmem:[%s1256_s4 + $0x88] sm:$0xff] %v848_v62 }
  0x2a   :  { %254 = vst [vmem:[%s1256_s4 + $0x90] sm:$0xff] %v858_v1 }
  0x2b   :  { %255 = vst [vmem:[%s1256_s4 + $0x98] sm:$0xff] %v868_v4 }
  0x2c   :  { %256 = vst [vmem:[%s1256_s4 + $0xa0] sm:$0xff] %v878_v7 }
  0x2d   :  { %257 = vst [vmem:[%s1256_s4 + $0xa8] sm:$0xff] %v888_v12 }
  0x2e   :  { %258 = vst [vmem:[%s1256_s4 + $0xb0] sm:$0xff] %v898_v17 }
  0x2f   :  { %259 = vst [vmem:[%s1256_s4 + $0xb8] sm:$0xff] %v908_v22 }
  0x30   :  { %260 = vst [vmem:[%s1256_s4 + $0xc0] sm:$0xff] %v918_v25 }
  0x31   :  { %261 = vst [vmem:[%s1256_s4 + $0xc8] sm:$0xff] %v928_v28 }
  0x32   :  { %262 = vst [vmem:[%s1256_s4 + $0xd0] sm:$0xff] %v938_v31 }
  0x33   :  { %263 = vst [vmem:[%s1256_s4 + $0xd8] sm:$0xff] %v948_v34 }
  0x34   :  { %264 = vst [vmem:[%s1256_s4 + $0xe0] sm:$0xff] %v958_v37 }
  0x35   :  { %265 = vst [vmem:[%s1256_s4 + $0xe8] sm:$0xff] %v970_v40 }
  0x36   :  { %266 = vst [vmem:[%s1256_s4 + $0xf0] sm:$0xff] %v982_v45 }
  0x37   :  { %267 = vst [vmem:[%s1256_s4 + $0xf8] sm:$0xff] %v994_v49 }
  0x38   :  { %268 = vst [vmem:[%s1256_s4 + $0x100] sm:$0xff] %v1007_v54 }
  0x39   :  { %269 = vst [vmem:[%s1256_s4 + $0x108] sm:$0xff] %v1018_v58 }
  0x3a   :  { %270 = vst [vmem:[%s1256_s4 + $0x110] sm:$0xff] %v1026_v61 }
  0x3b   :  { %271 = vst [vmem:[%s1256_s4 + $0x118] sm:$0xff] %v1034_v0 }
  0x3c   :  { %272 = vst [vmem:[%s1256_s4 + $0x120] sm:$0x1f] %v197_v3 }
  0x3d   :  { %273 = vst [vmem:[%s1256_s4 + $0x128] sm:$0x1f] %v199_v6 }
  0x3e   :  { %274 = vst [vmem:[%s1256_s4 + $0x130] sm:$0x1f] %v201_v10 }
  0x3f   :  { %275 = vst [vmem:[%s1256_s4 + $0x138] sm:$0x1f] %v203_v13 }
  0x40   :  { %542 = vst [vmem:[%s1256_s4 + $0x140] sm:$0xe0] %v297_v14 }
  0x41   :  { %546 = vst [vmem:[%s1256_s4 + $0x160] sm:$0x1] %v297_v14 }
  0x42   :  { %543 = vst [vmem:[%s1256_s4 + $0x148] sm:$0xe0] %v298_v20 }
  0x43   :  { %547 = vst [vmem:[%s1256_s4 + $0x168] sm:$0x1] %v298_v20 }
  0x44   :  { %544 = vst [vmem:[%s1256_s4 + $0x150] sm:$0xe0] %v299_v24 }
  0x45   :  { %548 = vst [vmem:[%s1256_s4 + $0x170] sm:$0x1] %v299_v24 }
  0x46   :  { %545 = vst [vmem:[%s1256_s4 + $0x158] sm:$0xe0] %v300_v26 }
  0x47   :  { %549 = vst [vmem:[%s1256_s4 + $0x178] sm:$0x1] %v300_v26 }
  0x48   :  { %550 = vst [vmem:[%s1256_s4 + $0x160] sm:$0xfe] %v684_v8  ;;  %v345_v8 = vld [vmem:[%s1254_s2 + $0x100] sm:$0xf] }
  0x49   :  { %551 = vst [vmem:[%s1256_s4 + $0x168] sm:$0xfe] %v686_v9  ;;  %v346_v9 = vld [vmem:[%s1254_s2 + $0x108] sm:$0xf] }
  0x4a   :  { %552 = vst [vmem:[%s1256_s4 + $0x170] sm:$0xfe] %v699_v15  ;;  %v347_v15 = vld [vmem:[%s1254_s2 + $0x110] sm:$0xf] }
  0x4b   :  { %553 = vst [vmem:[%s1256_s4 + $0x178] sm:$0xfe] %v701_v16  ;;  %v445_v16 = vrot.slane %v345_v8, 7 }
  0x4c   :  { %554 = vst [vmem:[%s1256_s4 + $0x180] sm:$0xff] %v716_v18  ;;  %v348_v18 = vld [vmem:[%s1254_s2 + $0x118] sm:$0xf] }
  0x4d   :  { %555 = vst [vmem:[%s1256_s4 + $0x188] sm:$0xff] %v732_v21  ;;  %v447_v21 = vrot.slane %v346_v9, 7 }
  0x4e   :  { %556 = vst [vmem:[%s1256_s4 + $0x190] sm:$0xff] %v779_v41  ;;  %v449_v41 = vrot.slane %v347_v15, 7 }
  0x4f   :  { %557 = vst [vmem:[%s1256_s4 + $0x198] sm:$0xff] %v789_v44  ;;  %v451_v44 = vrot.slane %v348_v18, 7 }
  0x50   :  { %558 = vst [vmem:[%s1256_s4 + $0x1a0] sm:$0xff] %v798_v47  ;;  %v446_v47 = vsel %vm135_vm0, %v960_v38, %v445_v16 }
  0x51   :  { %559 = vst [vmem:[%s1256_s4 + $0x1a8] sm:$0xff] %v808_v50  ;;  %v448_v50 = vsel %vm135_vm0, %v972_v42, %v447_v21 }
  0x52   :  { %560 = vst [vmem:[%s1256_s4 + $0x1b0] sm:$0xff] %v818_v53  ;;  %v450_v53 = vsel %vm135_vm0, %v984_v46, %v449_v41 }
  0x53   :  { %561 = vst [vmem:[%s1256_s4 + $0x1b8] sm:$0xff] %v828_v56  ;;  %v452_v56 = vsel %vm135_vm0, %v996_v51, %v451_v44 }
  0x54   :  { %562 = vst [vmem:[%s1256_s4 + $0x1c0] sm:$0xff] %v838_v59 }
  0x55   :  { %563 = vst [vmem:[%s1256_s4 + $0x1c8] sm:$0xff] %v848_v62 }
  0x56   :  { %564 = vst [vmem:[%s1256_s4 + $0x1d0] sm:$0xff] %v858_v1 }
  0x57   :  { %565 = vst [vmem:[%s1256_s4 + $0x1d8] sm:$0xff] %v868_v4 }
  0x58   :  { %566 = vst [vmem:[%s1256_s4 + $0x1e0] sm:$0xff] %v878_v7 }
  0x59   :  { %567 = vst [vmem:[%s1256_s4 + $0x1e8] sm:$0xff] %v888_v12 }
  0x5a   :  { %568 = vst [vmem:[%s1256_s4 + $0x1f0] sm:$0xff] %v898_v17 }
  0x5b   :  { %569 = vst [vmem:[%s1256_s4 + $0x1f8] sm:$0xff] %v908_v22 }
  0x5c   :  { %570 = vst [vmem:[%s1256_s4 + $0x200] sm:$0xff] %v918_v25 }
  0x5d   :  { %571 = vst [vmem:[%s1256_s4 + $0x208] sm:$0xff] %v928_v28 }
  0x5e   :  { %572 = vst [vmem:[%s1256_s4 + $0x210] sm:$0xff] %v938_v31 }
  0x5f   :  { %573 = vst [vmem:[%s1256_s4 + $0x218] sm:$0xff] %v948_v34 }
  0x60   :  { %574 = vst [vmem:[%s1256_s4 + $0x220] sm:$0xff] %v958_v37 }
  0x61   :  { %575 = vst [vmem:[%s1256_s4 + $0x228] sm:$0xff] %v970_v40 }
  0x62   :  { %576 = vst [vmem:[%s1256_s4 + $0x230] sm:$0xff] %v982_v45 }
  0x63   :  { %577 = vst [vmem:[%s1256_s4 + $0x238] sm:$0xff] %v994_v49 }
  0x64   :  { %578 = vst [vmem:[%s1256_s4 + $0x240] sm:$0xff] %v1007_v54 }
  0x65   :  { %579 = vst [vmem:[%s1256_s4 + $0x248] sm:$0xff] %v1018_v58 }
  0x66   :  { %580 = vst [vmem:[%s1256_s4 + $0x250] sm:$0xff] %v1026_v61 }
  0x67   :  { %581 = vst [vmem:[%s1256_s4 + $0x258] sm:$0xff] %v1034_v0 }
  0x68   :  { %582 = vst [vmem:[%s1256_s4 + $0x260] sm:$0x1f] %v446_v47 }
  0x69   :  { %583 = vst [vmem:[%s1256_s4 + $0x268] sm:$0x1f] %v448_v50 }
  0x6a   :  { %584 = vst [vmem:[%s1256_s4 + $0x270] sm:$0x1f] %v450_v53 }
  0x6b   :  { %585 = vst [vmem:[%s1256_s4 + $0x278] sm:$0x1f] %v452_v56 }

</bundles_post_ra>
